<compile_context>
chip_gen: v7x
topology: tpu7x:2x2x1
jax: 0.10.0
libtpu: 0.0.40
codegen_flags: <defaults>
</compile_context>

<pallas_src>
import jax
import jax.numpy as jnp
from jax.experimental import pallas as pl
from jax.experimental.pallas import tpu as pltpu


def _bcast_mul_kernel(x_ref, s_ref, o_ref):
    # x_ref: (Nb, HW, C) tile, s_ref: (Nb, 1, C) per-channel scale.
    # Implicit broadcast along the sublane (HW) axis; no jnp.broadcast_to calls
    # so nothing gets re-materialized if this kernel later gains a grid loop.
    o_ref[...] = x_ref[...] * s_ref[...]


def broadcast_mul(x, scale):
    """x: (N, C, H, W), scale: (N, C, 1, 1) -> x * scale (elementwise broadcast)."""
    n, c, h, w = x.shape
    assert scale.shape == (n, c, 1, 1)
    hw = h * w

    # Lane-dense NHWC layout: rows = spatial, lanes = channels.
    x2 = jnp.transpose(x, (0, 2, 3, 1)).reshape(n, hw, c)
    s2 = scale.reshape(n, 1, c)
    out_shape = jax.ShapeDtypeStruct((n, hw, c), x.dtype)

    if n == 1:
        # Tiny, memory-bound op: single whole-array VMEM block, no grid.
        out = pl.pallas_call(
            _bcast_mul_kernel,
            out_shape=out_shape,
            in_specs=[
                pl.BlockSpec(memory_space=pltpu.MemorySpace.VMEM),
                pl.BlockSpec(memory_space=pltpu.MemorySpace.VMEM),
            ],
            out_specs=pl.BlockSpec(memory_space=pltpu.MemorySpace.VMEM),
        )(x2, s2)
    else:
        # Batch-parallel grid: one (1, HW, C) lane-dense block per batch element,
        # marked "parallel" so it can be split across TensorCores (v7x megacore).
        # TODO(synk): for very large HW*C per batch element, additionally tile HW.
        out = pl.pallas_call(
            _bcast_mul_kernel,
            out_shape=out_shape,
            grid=(n,),
            in_specs=[
                pl.BlockSpec((1, hw, c), lambda i: (i, 0, 0)),
                pl.BlockSpec((1, 1, c), lambda i: (i, 0, 0)),
            ],
            out_specs=pl.BlockSpec((1, hw, c), lambda i: (i, 0, 0)),
            compiler_params=pltpu.CompilerParams(
                dimension_semantics=("parallel",)
            ),
        )(x2, s2)

    # Back to NCHW to keep the PyTorch module's output layout.
    return jnp.transpose(out.reshape(n, h, w, c), (0, 3, 1, 2))


if __name__ == "__main__":
    key = jax.random.PRNGKey(0)
    k1, k2, k3, k4 = jax.random.split(key, 4)

    # Shapes from the PyTorch module's forward: x330 (1,960,7,7), x335 (1,960,1,1)
    x330 = jax.random.normal(k1, (1, 960, 7, 7), dtype=jnp.float32)
    x335 = jax.random.normal(k2, (1, 960, 1, 1), dtype=jnp.float32)

    y = broadcast_mul(x330, x335)
    jax.block_until_ready(y)
    ref = x330 * x335
    assert y.shape == (1, 960, 7, 7)
    assert jnp.allclose(y, ref), "mismatch vs reference (n=1 path)"

    # Exercise the batch-parallel grid path at a small shape too.
    xb = jax.random.normal(k3, (2, 256, 8, 8), dtype=jnp.float32)
    sb = jax.random.normal(k4, (2, 256, 1, 1), dtype=jnp.float32)
    yb = broadcast_mul(xb, sb)
    jax.block_until_ready(yb)
    assert jnp.allclose(yb, xb * sb), "mismatch vs reference (n>1 path)"

    print("KERNEL_OK")
</pallas_src>

<mosaic_0001>
module attributes {stable_mosaic.version = 11 : i64} {
  func.func @_bcast_mul_kernel(%arg0: memref<1x49x960xf32, #tpu.memory_space<vmem>>, %arg1: memref<1x1x960xf32, #tpu.memory_space<vmem>>, %arg2: memref<1x49x960xf32, #tpu.memory_space<vmem>>) attributes {dimension_semantics = [], scalar_prefetch = 0 : i64, scratch_operands = 0 : i64, tpu.core_type = #tpu.core_type<tc>} {
    %c0 = arith.constant 0 : index
    %c0_0 = arith.constant 0 : index
    %c0_1 = arith.constant 0 : index
    %0 = vector.load %arg0[%c0, %c0_0, %c0_1] : memref<1x49x960xf32, #tpu.memory_space<vmem>>, vector<1x49x960xf32>
    %c0_2 = arith.constant 0 : index
    %c0_3 = arith.constant 0 : index
    %c0_4 = arith.constant 0 : index
    %1 = vector.load %arg1[%c0_2, %c0_3, %c0_4] : memref<1x1x960xf32, #tpu.memory_space<vmem>>, vector<1x1x960xf32>
    %2 = vector.broadcast %1 : vector<1x1x960xf32> to vector<1x49x960xf32>
    %3 = arith.mulf %0, %2 : vector<1x49x960xf32>
    %c0_5 = arith.constant 0 : index
    %c0_6 = arith.constant 0 : index
    %c0_7 = arith.constant 0 : index
    %4 = vector.load %arg2[%c0_5, %c0_6, %c0_7] : memref<1x49x960xf32, #tpu.memory_space<vmem>>, vector<1x49x960xf32>
    tpu.vector_store %arg2[%c0_5, %c0_6, %c0_7], %3 {strides = array<i32>} : memref<1x49x960xf32, #tpu.memory_space<vmem>>, vector<1x49x960xf32>,
    return
  }
}

</mosaic_0001>

<bundles_post_ra>
// kernel: tpu_custom_call.1
= control target key start
LH: loop header
LB: loop body
LE: loop exit
PB: predicated region body
PF: predicated region fallthrough
CT: control target
= control target key end

     0   :  { %v69_v0 = vlaneseq  ;;  %vm172_vm0 = vcmask 523264   ;;  %vm221_vm1 = vcmask 516096   ;;  %s660_s0 = inlined_call_operand.vmem [shape: f32[1,49,960], index: 0, kind: input, shape index: {}]   ;;  %s661_s1 = inlined_call_operand.vmem [shape: f32[1,1,960], index: 1, kind: input, shape index: {}]   ;;  %s662_s2 = inlined_call_operand.vmem [shape: f32[1,49,960], index: 2, kind: output, shape index: {}]  }
   0x1   :  { %v67_v1 = vld [vmem:[%s661_s1] sm:$0xff]  ;;  %v12_v4 = vld [vmem:[%s660_s0 + $0x8] sm:$0xff]  ;;  %v13_v5 = vld [vmem:[%s660_s0 + $0x10] sm:$0xff] }
   0x2   :  { %v70_v2 = vshrl.u32 %v69_v0, 7  ;;  %v11_v3 = vld [vmem:[%s660_s0] sm:$0xff]  ;;  %v14_v6 = vld [vmem:[%s660_s0 + $0x18] sm:$0xff]  ;;  %v16_v12 = vld [vmem:[%s660_s0 + $0x28] sm:$0xff] }
   0x3   :  { %v15_v11 = vld [vmem:[%s660_s0 + $0x20] sm:$0xff]  ;;  %v17_v13 = vld [vmem:[%s660_s0 + $0x30] sm:$0xff]  ;;  %v18_v14 = vld [vmem:[%s660_s0 + $0x38] sm:$0xff] }
   0x4   :  { %v71_v7 = vsub.s32 0, %v70_v2  ;;  %v75_v8 = vsub.s32 1, %v70_v2  ;;  %v79_v9 = vsub.s32 2, %v70_v2  ;;  %v83_v10 = vsub.s32 3, %v70_v2  ;;  %v19_v19 = vld [vmem:[%s660_s0 + $0x40] sm:$0xff]  ;;  %v20_v20 = vld [vmem:[%s660_s0 + $0x48] sm:$0xff] }
   0x5   :  { %v87_v15 = vsub.s32 4, %v70_v2  ;;  %v91_v16 = vsub.s32 5, %v70_v2  ;;  %v95_v17 = vsub.s32 6, %v70_v2  ;;  %v99_v18 = vsub.s32 7, %v70_v2  ;;  %v21_v21 = vld [vmem:[%s660_s0 + $0x50] sm:$0xff]  ;;  %v22_v22 = vld [vmem:[%s660_s0 + $0x58] sm:$0xff] }
   0x6   :  { %v281_v23 = vrot.slane %v67_v1, %v71_v7  ;;  %v283_v24 = vrot.slane %v67_v1, %v75_v8  ;;  %v285_v25 = vrot.slane %v67_v1, %v79_v9  ;;  %v287_v26 = vrot.slane %v67_v1, %v83_v10  ;;  %v23_v27 = vld [vmem:[%s660_s0 + $0x60] sm:$0xff]  ;;  %v24_v28 = vld [vmem:[%s660_s0 + $0x68] sm:$0xff]  ;;  %v25_v29 = vld [vmem:[%s660_s0 + $0x70] sm:$0xff] }
   0x7   :  { %v298_v30 = vrot.slane %v67_v1, %v87_v15  ;;  %v300_v31 = vrot.slane %v67_v1, %v91_v16  ;;  %v302_v32 = vrot.slane %v67_v1, %v95_v17  ;;  %v304_v33 = vrot.slane %v67_v1, %v99_v18  ;;  %v26_v34 = vld [vmem:[%s660_s0 + $0x78] sm:$0xff]  ;;  %v27_v35 = vld [vmem:[%s660_s0 + $0x80] sm:$0xff]  ;;  %v28_v36 = vld [vmem:[%s660_s0 + $0x88] sm:$0xff] }
   0x8   :  { %v109_v37 = vmul.f32 %v281_v23, %v11_v3  ;;  %v110_v38 = vmul.f32 %v283_v24, %v12_v4  ;;  %v111_v39 = vmul.f32 %v285_v25, %v13_v5  ;;  %v112_v40 = vmul.f32 %v287_v26, %v14_v6  ;;  %v29_v41 = vld [vmem:[%s660_s0 + $0x90] sm:$0xff]  ;;  %v30_v42 = vld [vmem:[%s660_s0 + $0x98] sm:$0xff]  ;;  %v31_v43 = vld [vmem:[%s660_s0 + $0xa0] sm:$0xff] }
   0x9   :  { %v113_v44 = vmul.f32 %v298_v30, %v15_v11  ;;  %v114_v45 = vmul.f32 %v300_v31, %v16_v12  ;;  %v115_v46 = vmul.f32 %v302_v32, %v17_v13  ;;  %v116_v47 = vmul.f32 %v304_v33, %v18_v14  ;;  %v32_v48 = vld [vmem:[%s660_s0 + $0xa8] sm:$0xff]  ;;  %v33_v49 = vld [vmem:[%s660_s0 + $0xb0] sm:$0xff]  ;;  %v34_v50 = vld [vmem:[%s660_s0 + $0xb8] sm:$0xff] }
   0xa   :  { %165 = vst [vmem:[%s662_s2] sm:$0xff] %v109_v37  ;;  %166 = vst [vmem:[%s662_s2 + $0x8] sm:$0xff] %v110_v38  ;;  %v117_v51 = vmul.f32 %v281_v23, %v19_v19  ;;  %v118_v52 = vmul.f32 %v283_v24, %v20_v20  ;;  %v119_v53 = vmul.f32 %v285_v25, %v21_v21  ;;  %v35_v55 = vld [vmem:[%s660_s0 + $0xc0] sm:$0xff]  ;;  %v36_v56 = vld [vmem:[%s660_s0 + $0xc8] sm:$0xff] }
   0xb   :  { %167 = vst [vmem:[%s662_s2 + $0x10] sm:$0xff] %v111_v39  ;;  %168 = vst [vmem:[%s662_s2 + $0x18] sm:$0xff] %v112_v40  ;;  %v120_v54 = vmul.f32 %v287_v26, %v22_v22  ;;  %v37_v57 = vld [vmem:[%s660_s0 + $0xd0] sm:$0xff]  ;;  %v121_v58 = vmul.f32 %v298_v30, %v23_v27  ;;  %v122_v59 = vmul.f32 %v300_v31, %v24_v28  ;;  %v38_v62 = vld [vmem:[%s660_s0 + $0xd8] sm:$0xff] }
   0xc   :  { %169 = vst [vmem:[%s662_s2 + $0x20] sm:$0xff] %v113_v44  ;;  %170 = vst [vmem:[%s662_s2 + $0x28] sm:$0xff] %v114_v45  ;;  %v123_v60 = vmul.f32 %v302_v32, %v25_v29  ;;  %v124_v61 = vmul.f32 %v304_v33, %v26_v34  ;;  %v39_v63 = vld [vmem:[%s660_s0 + $0xe0] sm:$0xff]  ;;  %v40_v0 = vld [vmem:[%s660_s0 + $0xe8] sm:$0xff]  ;;  %v125_v1 = vmul.f32 %v281_v23, %v27_v35 }
   0xd   :  { %171 = vst [vmem:[%s662_s2 + $0x30] sm:$0xff] %v115_v46  ;;  %173 = vst.msk [vmem:[%s662_s2 + $0x38] sm:$0xff] %vm172_vm0, %v116_v47  ;;  %v126_v2 = vmul.f32 %v283_v24, %v28_v36  ;;  %v127_v3 = vmul.f32 %v285_v25, %v29_v41  ;;  %v128_v4 = vmul.f32 %v287_v26, %v30_v42  ;;  %v41_v5 = vld [vmem:[%s660_s0 + $0xf0] sm:$0xff]  ;;  %v42_v6 = vld [vmem:[%s660_s0 + $0xf8] sm:$0xff] }
   0xe   :  { %174 = vst [vmem:[%s662_s2 + $0x40] sm:$0xff] %v117_v51  ;;  %175 = vst [vmem:[%s662_s2 + $0x48] sm:$0xff] %v118_v52  ;;  %v43_v7 = vld [vmem:[%s660_s0 + $0x100] sm:$0xff]  ;;  %v129_v8 = vmul.f32 %v298_v30, %v31_v43  ;;  %v130_v9 = vmul.f32 %v300_v31, %v32_v48  ;;  %v131_v10 = vmul.f32 %v302_v32, %v33_v49  ;;  %v44_v12 = vld [vmem:[%s660_s0 + $0x108] sm:$0xff] }
   0xf   :  { %176 = vst [vmem:[%s662_s2 + $0x50] sm:$0xff] %v119_v53  ;;  %177 = vst [vmem:[%s662_s2 + $0x58] sm:$0xff] %v120_v54  ;;  %v132_v11 = vmul.f32 %v304_v33, %v34_v50  ;;  %v45_v13 = vld [vmem:[%s660_s0 + $0x110] sm:$0xff]  ;;  %v46_v14 = vld [vmem:[%s660_s0 + $0x118] sm:$0xff]  ;;  %v133_v15 = vmul.f32 %v281_v23, %v35_v55  ;;  %v134_v16 = vmul.f32 %v283_v24, %v36_v56 }
  0x10   :  { %178 = vst [vmem:[%s662_s2 + $0x60] sm:$0xff] %v121_v58  ;;  %179 = vst [vmem:[%s662_s2 + $0x68] sm:$0xff] %v122_v59  ;;  %v135_v17 = vmul.f32 %v285_v25, %v37_v57  ;;  %v136_v18 = vmul.f32 %v287_v26, %v38_v62  ;;  %v47_v19 = vld [vmem:[%s660_s0 + $0x120] sm:$0xff]  ;;  %v48_v20 = vld [vmem:[%s660_s0 + $0x128] sm:$0xff]  ;;  %v137_v22 = vmul.f32 %v298_v30, %v39_v63 }
  0x11   :  { %180 = vst [vmem:[%s662_s2 + $0x70] sm:$0xff] %v123_v60  ;;  %181 = vst.msk [vmem:[%s662_s2 + $0x78] sm:$0xff] %vm172_vm0, %v124_v61  ;;  %v49_v21 = vld [vmem:[%s660_s0 + $0x130] sm:$0xff]  ;;  %v138_v27 = vmul.f32 %v300_v31, %v40_v0  ;;  %v139_v28 = vmul.f32 %v302_v32, %v41_v5  ;;  %v140_v29 = vmul.f32 %v304_v33, %v42_v6  ;;  %v50_v34 = vld [vmem:[%s660_s0 + $0x138] sm:$0xff] }
  0x12   :  { %182 = vst [vmem:[%s662_s2 + $0x80] sm:$0xff] %v125_v1  ;;  %183 = vst [vmem:[%s662_s2 + $0x88] sm:$0xff] %v126_v2  ;;  %v51_v35 = vld [vmem:[%s660_s0 + $0x140] sm:$0xff]  ;;  %v52_v36 = vld [vmem:[%s660_s0 + $0x148] sm:$0xff]  ;;  %v141_v37 = vmul.f32 %v281_v23, %v43_v7  ;;  %v142_v38 = vmul.f32 %v283_v24, %v44_v12  ;;  %v143_v39 = vmul.f32 %v285_v25, %v45_v13 }
  0x13   :  { %184 = vst [vmem:[%s662_s2 + $0x90] sm:$0xff] %v127_v3  ;;  %185 = vst [vmem:[%s662_s2 + $0x98] sm:$0xff] %v128_v4  ;;  %v144_v40 = vmul.f32 %v287_v26, %v46_v14  ;;  %v53_v41 = vld [vmem:[%s660_s0 + $0x150] sm:$0xff]  ;;  %v54_v42 = vld [vmem:[%s660_s0 + $0x158] sm:$0xff]  ;;  %v145_v44 = vmul.f32 %v298_v30, %v47_v19  ;;  %v146_v45 = vmul.f32 %v300_v31, %v48_v20 }
  0x14   :  { %186 = vst [vmem:[%s662_s2 + $0xa0] sm:$0xff] %v129_v8  ;;  %187 = vst [vmem:[%s662_s2 + $0xa8] sm:$0xff] %v130_v9  ;;  %v55_v43 = vld [vmem:[%s660_s0 + $0x160] sm:$0xff]  ;;  %v147_v46 = vmul.f32 %v302_v32, %v49_v21  ;;  %v148_v47 = vmul.f32 %v304_v33, %v50_v34  ;;  %v56_v48 = vld [vmem:[%s660_s0 + $0x168] sm:$0xff]  ;;  %v149_v51 = vmul.f32 %v281_v23, %v51_v35 }
  0x15   :  { %188 = vst [vmem:[%s662_s2 + $0xb0] sm:$0xff] %v131_v10  ;;  %189 = vst.msk [vmem:[%s662_s2 + $0xb8] sm:$0xff] %vm172_vm0, %v132_v11  ;;  %v57_v49 = vld [vmem:[%s660_s0 + $0x170] sm:$0xff]  ;;  %v58_v50 = vld [vmem:[%s660_s0 + $0x178] sm:$0xff]  ;;  %v150_v52 = vmul.f32 %v283_v24, %v52_v36  ;;  %v151_v53 = vmul.f32 %v285_v25, %v53_v41  ;;  %v152_v54 = vmul.f32 %v287_v26, %v54_v42 }
  0x16   :  { %190 = vst [vmem:[%s662_s2 + $0xc0] sm:$0xff] %v133_v15  ;;  %191 = vst [vmem:[%s662_s2 + $0xc8] sm:$0xff] %v134_v16  ;;  %v59_v55 = vld [vmem:[%s660_s0 + $0x180] sm:$0x1]  ;;  %v60_v56 = vld [vmem:[%s660_s0 + $0x188] sm:$0x1]  ;;  %v153_v58 = vmul.f32 %v298_v30, %v55_v43  ;;  %v154_v59 = vmul.f32 %v300_v31, %v56_v48  ;;  %v155_v60 = vmul.f32 %v302_v32, %v57_v49 }
  0x17   :  { %192 = vst [vmem:[%s662_s2 + $0xd0] sm:$0xff] %v135_v17  ;;  %193 = vst [vmem:[%s662_s2 + $0xd8] sm:$0xff] %v136_v18  ;;  %v61_v57 = vld [vmem:[%s660_s0 + $0x190] sm:$0x1]  ;;  %v156_v61 = vmul.f32 %v304_v33, %v58_v50  ;;  %v62_v62 = vld [vmem:[%s660_s0 + $0x198] sm:$0x1]  ;;  %v157_v1 = vmul.f32 %v281_v23, %v59_v55  ;;  %v158_v2 = vmul.f32 %v283_v24, %v60_v56 }
  0x18   :  { %194 = vst [vmem:[%s662_s2 + $0xe0] sm:$0xff] %v137_v22  ;;  %195 = vst [vmem:[%s662_s2 + $0xe8] sm:$0xff] %v138_v27  ;;  %v63_v63 = vld [vmem:[%s660_s0 + $0x1a0] sm:$0x1]  ;;  %v64_v0 = vld [vmem:[%s660_s0 + $0x1a8] sm:$0x1]  ;;  %v159_v3 = vmul.f32 %v285_v25, %v61_v57  ;;  %v160_v4 = vmul.f32 %v287_v26, %v62_v62 }
  0x19   :  { %196 = vst [vmem:[%s662_s2 + $0xf0] sm:$0xff] %v139_v28  ;;  %197 = vst.msk [vmem:[%s662_s2 + $0xf8] sm:$0xff] %vm172_vm0, %v140_v29  ;;  %v65_v5 = vld [vmem:[%s660_s0 + $0x1b0] sm:$0x1]  ;;  %v66_v6 = vld [vmem:[%s660_s0 + $0x1b8] sm:$0x1]  ;;  %v161_v23 = vmul.f32 %v298_v30, %v63_v63  ;;  %v162_v24 = vmul.f32 %v300_v31, %v64_v0 }
  0x1a   :  { %198 = vst [vmem:[%s662_s2 + $0x100] sm:$0xff] %v141_v37  ;;  %199 = vst [vmem:[%s662_s2 + $0x108] sm:$0xff] %v142_v38  ;;  %v163_v25 = vmul.f32 %v302_v32, %v65_v5  ;;  %v164_v26 = vmul.f32 %v304_v33, %v66_v6 }
  0x1b   :  { %200 = vst [vmem:[%s662_s2 + $0x110] sm:$0xff] %v143_v39  ;;  %201 = vst [vmem:[%s662_s2 + $0x118] sm:$0xff] %v144_v40 }
  0x1c   :  { %202 = vst [vmem:[%s662_s2 + $0x120] sm:$0xff] %v145_v44  ;;  %203 = vst [vmem:[%s662_s2 + $0x128] sm:$0xff] %v146_v45 }
  0x1d   :  { %204 = vst [vmem:[%s662_s2 + $0x130] sm:$0xff] %v147_v46  ;;  %205 = vst.msk [vmem:[%s662_s2 + $0x138] sm:$0xff] %vm172_vm0, %v148_v47 }
  0x1e   :  { %206 = vst [vmem:[%s662_s2 + $0x140] sm:$0xff] %v149_v51  ;;  %207 = vst [vmem:[%s662_s2 + $0x148] sm:$0xff] %v150_v52 }
  0x1f   :  { %208 = vst [vmem:[%s662_s2 + $0x150] sm:$0xff] %v151_v53  ;;  %209 = vst [vmem:[%s662_s2 + $0x158] sm:$0xff] %v152_v54 }
  0x20   :  { %210 = vst [vmem:[%s662_s2 + $0x160] sm:$0xff] %v153_v58  ;;  %211 = vst [vmem:[%s662_s2 + $0x168] sm:$0xff] %v154_v59 }
  0x21   :  { %212 = vst [vmem:[%s662_s2 + $0x170] sm:$0xff] %v155_v60  ;;  %213 = vst.msk [vmem:[%s662_s2 + $0x178] sm:$0xff] %vm172_vm0, %v156_v61 }
  0x22   :  { %214 = vst [vmem:[%s662_s2 + $0x180] sm:$0x1] %v157_v1  ;;  %215 = vst [vmem:[%s662_s2 + $0x188] sm:$0x1] %v158_v2 }
  0x23   :  { %216 = vst [vmem:[%s662_s2 + $0x190] sm:$0x1] %v159_v3  ;;  %217 = vst [vmem:[%s662_s2 + $0x198] sm:$0x1] %v160_v4 }
  0x24   :  { %218 = vst [vmem:[%s662_s2 + $0x1a0] sm:$0x1] %v161_v23  ;;  %219 = vst [vmem:[%s662_s2 + $0x1a8] sm:$0x1] %v162_v24 }
  0x25   :  { %220 = vst [vmem:[%s662_s2 + $0x1b0] sm:$0x1] %v163_v25  ;;  %222 = vst.msk [vmem:[%s662_s2 + $0x1b8] sm:$0x1] %vm221_vm1, %v164_v26 }

</bundles_post_ra>
